<compile_context>
chip_gen: v7x
topology: tpu7x:2x2x1
jax: 0.10.0
libtpu: 0.0.40
codegen_flags: <defaults>
</compile_context>

<pallas_src>
import jax
import jax.numpy as jnp
from jax.experimental import pallas as pl
from jax.experimental.pallas import tpu as pltpu


def _round_up(a, b):
    return (a + b - 1) // b * b


def _sublane_pack(dtype):
    # Sublane packing factor: f32 -> 8, bf16 -> 16, int8/fp8 -> 32.
    return max(8, 32 // jnp.dtype(dtype).itemsize)


def _vmem_budget_bytes():
    """Generation-aware VMEM budget, leaving ~1/8 headroom for compiler scratch."""
    cap = 64 * 1024 * 1024  # conservative default (v7x per-TensorCore VMEM)
    try:
        info = pltpu.get_tpu_info()
        got = int(getattr(info, "vmem_capacity_bytes", 0))
        if got > 0:
            cap = got
    except Exception:
        pass  # query unavailable -> keep conservative default
    return cap - cap // 8  # 64 MiB -> 56 MiB, 128 MiB -> 112 MiB


def _uv_kernel(x_ref, u_ref, v_ref, b_ref, o_ref, inter_ref):
    """out tile = (x @ U) @ V + bias, with x @ U cached across the column axis."""
    j = pl.program_id(1)

    # Pass 1 (skinny matmul): runs exactly once per row tile, at j == 0.
    @pl.when(j == 0)
    def _():
        inter_ref[...] = jnp.dot(x_ref[...], u_ref[...],
                                 preferred_element_type=jnp.float32)

    # Pass 2: f32 intermediate (no bf16 round-trip) against the V column tile.
    out = jnp.dot(inter_ref[...], v_ref[...].astype(jnp.float32),
                  preferred_element_type=jnp.float32)
    o_ref[...] = (out + b_ref[...].astype(jnp.float32)).astype(o_ref.dtype)


def uv_forward(x, U, V, bias=None, *, tm=None, tn=512):
    """out = (x @ U) @ V + bias  (== x @ (U @ V) + bias), tiled for TPU."""
    orig_lead = x.shape[:-1]
    K, R = U.shape
    Rv, N = V.shape
    assert Rv == R and x.shape[-1] == K, "shape mismatch between x, U, V"

    x2 = x.reshape(-1, K)
    M = x2.shape[0]
    out_dtype = x2.dtype

    if bias is None:
        # use_bias=False path: fold in as zeros (tiny; keeps one kernel variant).
        bias = jnp.zeros((N,), dtype=out_dtype)
    bias2 = bias.reshape(1, N)

    # ---- rank padding (compute-neutral on MXU, lane-dense intermediate) ----
    # TODO(synk): hoist this one-time zero-pad of U/V to weight preparation.
    Rp = _round_up(R, 128)
    if Rp != R:
        U = jnp.pad(U, ((0, 0), (0, Rp - R)))
        V = jnp.pad(V, ((0, Rp - R), (0, 0)))

    budget = _vmem_budget_bytes()

    # ---- tile selection -----------------------------------------------------
    pack = _sublane_pack(x2.dtype)             # 8 (f32) / 16 (bf16) / 32 (int8)
    if tm is None:
        tm = 512 if budget >= 96 * 1024 * 1024 else 256
    tm = _round_up(tm, pack)
    tm_eff = min(tm, _round_up(M, pack))       # don't over-tile tiny M
    tn_eff = min(_round_up(tn, 128), _round_up(N, 128))

    def est_bytes(tm_, tn_):
        return (2 * tm_ * K * x2.dtype.itemsize        # x row tile (double-buffered)
                + 2 * K * Rp * U.dtype.itemsize        # U (grid-invariant, 2 bufs)
                + 2 * Rp * tn_ * V.dtype.itemsize      # V column tile
                + 2 * 8 * tn_ * bias2.dtype.itemsize   # bias tile (8-sublane padded)
                + 2 * tm_ * tn_ * out_dtype.itemsize   # out tile (double-buffered)
                + tm_ * Rp * 4)                        # f32 intermediate scratch

    # Shrink row tile, then column tile, until the estimate fits the budget.
    # TODO(synk): add a K grid axis (f32 (tm, Rp) accumulator for pass 1) for
    # very large K instead of shrinking tm below a few sublane packs.
    while est_bytes(tm_eff, tn_eff) > budget and tm_eff > 4 * pack:
        tm_eff = max(pack, _round_up(tm_eff // 2, pack))
    while est_bytes(tm_eff, tn_eff) > budget and tn_eff > 128:
        tn_eff = max(128, _round_up(tn_eff // 2, 128))

    grid = (pl.cdiv(M, tm_eff), pl.cdiv(N, tn_eff))
    vmem_limit = int(min(max(int(1.25 * est_bytes(tm_eff, tn_eff)),
                             32 * 1024 * 1024), budget))

    rows = grid[0] * tm_eff  # rows actually computed (incl. boundary padding)
    cost = pl.CostEstimate(
        flops=2 * rows * K * Rp + 2 * rows * Rp * grid[1] * tn_eff,
        transcendentals=0,
        bytes_accessed=int(
            M * K * x2.dtype.itemsize                  # x read once per row tile
            + K * Rp * U.dtype.itemsize                # U read once
            + grid[0] * Rp * N * V.dtype.itemsize      # V re-read per row tile
            + grid[0] * N * bias2.dtype.itemsize       # bias re-read per row tile
            + M * N * out_dtype.itemsize),             # output written once
    )

    out = pl.pallas_call(
        _uv_kernel,
        out_shape=jax.ShapeDtypeStruct((M, N), out_dtype),
        grid_spec=pltpu.PrefetchScalarGridSpec(
            num_scalar_prefetch=0,
            grid=grid,
            in_specs=[
                # x row tile: block index constant along j -> fetched once per row tile.
                pl.BlockSpec((tm_eff, K), lambda i, j: (i, 0)),
                # U: whole (K, Rp) matrix, grid-invariant -> DMA'd once.
                pl.BlockSpec((K, Rp), lambda i, j: (0, 0)),
                # V / bias column tiles: default double-buffering (index changes per j).
                pl.BlockSpec((Rp, tn_eff), lambda i, j: (0, j)),
                pl.BlockSpec((1, tn_eff), lambda i, j: (0, j)),
            ],
            out_specs=pl.BlockSpec((tm_eff, tn_eff), lambda i, j: (i, j)),
            scratch_shapes=[pltpu.VMEM((tm_eff, Rp), jnp.float32)],
        ),
        compiler_params=pltpu.CompilerParams(
            # j must be "arbitrary": the intermediate scratch carries across it.
            # Megacore shards only the row axis -> x HBM traffic stays 1x.
            dimension_semantics=("parallel", "arbitrary"),
            vmem_limit_bytes=vmem_limit,
        ),
        cost_estimate=cost,
    )(x2, U, V, bias2)

    return out.reshape(*orig_lead, N)


if __name__ == "__main__":
    # Small shapes exercising ragged M (111 rows), non-128-multiple out_features
    # (320), rank padding (16 -> 128) and partial boundary blocks on both axes.
    in_features, out_features, rank = 128, 320, 16
    batch, seq = 3, 37  # M = 111 rows

    key = jax.random.PRNGKey(0)
    kx, ku, kv, kb = jax.random.split(key, 4)
    x = jax.random.normal(kx, (batch, seq, in_features), dtype=jnp.float32)
    U = jax.random.normal(ku, (in_features, rank), dtype=jnp.float32) * 0.1
    V = jax.random.normal(kv, (rank, out_features), dtype=jnp.float32) * 0.1
    bias = jax.random.normal(kb, (out_features,), dtype=jnp.float32) * 0.01

    ref = x @ (U @ V) + bias  # training path == eval path math

    # f32, small tiles -> (2, 3) grid with partial boundary blocks on both axes.
    out = jax.block_until_ready(uv_forward(x, U, V, bias, tm=64, tn=128))
    assert out.shape == ref.shape == (batch, seq, out_features)
    assert jnp.allclose(out, ref, atol=5e-4, rtol=5e-4), "f32 mismatch vs reference"

    # bf16 operands, default (generation-aware) tiles, use_bias=False path.
    ref_nb = x @ (U @ V)
    out_bf16 = jax.block_until_ready(
        uv_forward(x.astype(jnp.bfloat16), U.astype(jnp.bfloat16),
                   V.astype(jnp.bfloat16)))
    assert out_bf16.dtype == jnp.bfloat16
    assert jnp.allclose(out_bf16.astype(jnp.float32), ref_nb, atol=5e-2, rtol=5e-2), \
        "bf16 mismatch vs reference"

    print("KERNEL_OK")
</pallas_src>

<mosaic_0001>
module attributes {stable_mosaic.version = 11 : i64} {
  func.func @_uv_kernel(%arg0: i32, %arg1: i32, %arg2: memref<64x128xf32, #tpu.memory_space<vmem>>, %arg3: memref<128x128xf32, #tpu.memory_space<vmem>>, %arg4: memref<128x128xf32, #tpu.memory_space<vmem>>, %arg5: memref<1x128xf32, #tpu.memory_space<vmem>>, %arg6: memref<64x128xf32, #tpu.memory_space<vmem>>, %arg7: memref<64x128xf32, #tpu.memory_space<vmem>>) attributes {dimension_semantics = [#tpu.dimension_semantics<parallel>, #tpu.dimension_semantics<arbitrary>], iteration_bounds = array<i64: 2, 3>, scalar_prefetch = 0 : i64, scratch_operands = 1 : i64, tpu.core_type = #tpu.core_type<tc>, window_params = [{transform_indices = @transform_0, window_bounds = array<i64: 64, 128>}, {pipeline_mode = #tpu.pipeline_mode<synchronous>, transform_indices = @transform_1, window_bounds = array<i64: 128, 128>}, {transform_indices = @transform_2, window_bounds = array<i64: 128, 128>}, {transform_indices = @transform_3, window_bounds = array<i64: 1, 128>}, {transform_indices = @transform_4, window_bounds = array<i64: 64, 128>}]} {
    %c0_i32 = arith.constant 0 : i32
    %0 = arith.cmpi eq, %arg1, %c0_i32 : i32
    %1 = arith.extui %0 : i1 to i32
    %c0_i32_0 = arith.constant 0 : i32
    %2 = arith.cmpi ne, %1, %c0_i32_0 : i32
    scf.if %2 {
      %c0_8 = arith.constant 0 : index
      %c0_9 = arith.constant 0 : index
      %10 = vector.load %arg2[%c0_8, %c0_9] : memref<64x128xf32, #tpu.memory_space<vmem>>, vector<64x128xf32>
      %c0_10 = arith.constant 0 : index
      %c0_11 = arith.constant 0 : index
      %11 = vector.load %arg3[%c0_10, %c0_11] : memref<128x128xf32, #tpu.memory_space<vmem>>, vector<128x128xf32>
      %cst_12 = arith.constant dense<0.000000e+00> : vector<64x128xf32>
      %12 = tpu.matmul %10, %11, %cst_12 {dimension_numbers = #tpu.dot_dimension_numbers<[1], [0], [0], [1], [0, 0, 1, 1], [], []>} : vector<64x128xf32>, vector<128x128xf32>, vector<64x128xf32> -> vector<64x128xf32>
      %c0_13 = arith.constant 0 : index
      %c0_14 = arith.constant 0 : index
      %13 = vector.load %arg7[%c0_13, %c0_14] : memref<64x128xf32, #tpu.memory_space<vmem>>, vector<64x128xf32>
      tpu.vector_store %arg7[%c0_13, %c0_14], %12 {strides = array<i32>} : memref<64x128xf32, #tpu.memory_space<vmem>>, vector<64x128xf32>,
    } else {
    }
    %c0 = arith.constant 0 : index
    %c0_1 = arith.constant 0 : index
    %3 = vector.load %arg7[%c0, %c0_1] : memref<64x128xf32, #tpu.memory_space<vmem>>, vector<64x128xf32>
    %c0_2 = arith.constant 0 : index
    %c0_3 = arith.constant 0 : index
    %4 = vector.load %arg4[%c0_2, %c0_3] : memref<128x128xf32, #tpu.memory_space<vmem>>, vector<128x128xf32>
    %cst = arith.constant dense<0.000000e+00> : vector<64x128xf32>
    %5 = tpu.matmul %3, %4, %cst {dimension_numbers = #tpu.dot_dimension_numbers<[1], [0], [0], [1], [0, 0, 1, 1], [], []>} : vector<64x128xf32>, vector<128x128xf32>, vector<64x128xf32> -> vector<64x128xf32>
    %c0_4 = arith.constant 0 : index
    %c0_5 = arith.constant 0 : index
    %6 = vector.load %arg5[%c0_4, %c0_5] : memref<1x128xf32, #tpu.memory_space<vmem>>, vector<1x128xf32>
    %7 = vector.broadcast %6 : vector<1x128xf32> to vector<64x128xf32>
    %8 = arith.addf %5, %7 : vector<64x128xf32>
    %c0_6 = arith.constant 0 : index
    %c0_7 = arith.constant 0 : index
    %9 = vector.load %arg6[%c0_6, %c0_7] : memref<64x128xf32, #tpu.memory_space<vmem>>, vector<64x128xf32>
    tpu.vector_store %arg6[%c0_6, %c0_7], %8 {strides = array<i32>} : memref<64x128xf32, #tpu.memory_space<vmem>>, vector<64x128xf32>,
    return
  }
  func.func @transform_0(%arg0: i32, %arg1: i32) -> (i32, i32) {
    %c0_i32 = arith.constant 0 : i32
    %c0_i32_0 = arith.constant 0 : i32
    return %arg0, %c0_i32 : i32, i32
  }
  func.func @transform_1(%arg0: i32, %arg1: i32) -> (i32, i32) {
    %c0_i32 = arith.constant 0 : i32
    %c0_i32_0 = arith.constant 0 : i32
    %c0_i32_1 = arith.constant 0 : i32
    return %c0_i32, %c0_i32_0 : i32, i32
  }
  func.func @transform_2(%arg0: i32, %arg1: i32) -> (i32, i32) {
    %c0_i32 = arith.constant 0 : i32
    %c0_i32_0 = arith.constant 0 : i32
    return %c0_i32, %arg1 : i32, i32
  }
  func.func @transform_3(%arg0: i32, %arg1: i32) -> (i32, i32) {
    %c0_i32 = arith.constant 0 : i32
    %c0_i32_0 = arith.constant 0 : i32
    return %c0_i32, %arg1 : i32, i32
  }
  func.func @transform_4(%arg0: i32, %arg1: i32) -> (i32, i32) {
    %c0_i32 = arith.constant 0 : i32
    return %arg0, %arg1 : i32, i32
  }
}

</mosaic_0001>

<bundles_post_ra>
// kernel: tpu_custom_call.1
= control target key start
LH: loop header
LB: loop body
LE: loop exit
PB: predicated region body
PF: predicated region fallthrough
CT: control target
= control target key end

     0   :  { %s1788_s0 = inlined_call_operand.vmem [shape: f32[111,128], index: 0, kind: input, shape index: {}]   ;;  %s1789_s1 = inlined_call_operand.vmem [shape: f32[128,128], index: 1, kind: input, shape index: {}]   ;;  %s1790_s2 = inlined_call_operand.vmem [shape: f32[128,320], index: 2, kind: input, shape index: {}]   ;;  %s1791_s3 = inlined_call_operand.vmem [shape: f32[1,320], index: 3, kind: input, shape index: {}]   ;;  %s1792_s4 = inlined_call_operand.vmem [shape: f32[111,320], index: 4, kind: output, shape index: {}]  }
   0x1   :  { %1794 = sst [smem:[#allocation6_spill]] %s1790_s2 }
   0x2   :  { %s1491_s15 = smov 0   ;;  %s1493_s16 = smov 0  }
   0x3   :  { %s1495_s17 = smov 0   ;;  %s1497_s18 = smov 0  }
   0x4   :  { %s1499_s19 = smov 0   ;;  %s1501_s20 = smov 0  }
   0x5   :  { %s1503_s21 = smov 0   ;;  %s1505_s22 = smov 0  }
   0x6   :  { %s1507_s23 = smov 0  }
   0x7 LB: > { %s931_s24 = sadd.s32 4294967295, %s1432_s23   ;;  %s23_s25 = sadd.s32 1, %s1424_s21  ;;  %s1432_s23 = sphi %s1507_s23, %s14_s23   ;;  %s1428_s22 = sphi %s1505_s22, %s1809_s22   ;;  %s1424_s21 = sphi %s1503_s21, %s1808_s21   ;;  %s1420_s20 = sphi %s1501_s20, %s1807_s20   ;;  %s1416_s19 = sphi %s1499_s19, %s1806_s19   ;;  %s1412_s18 = sphi %s1497_s18, %s1805_s18   ;;  %s1408_s17 = sphi %s1495_s17, %s1804_s17   ;;  %s1404_s16 = sphi %s1493_s16, %s1803_s16   ;;  %s1400_s15 = sphi %s1491_s15, %s1802_s15  }
   0x8   : > { %p24_p0 = scmp.ge.s32.totalorder %s23_s25, 3  ;;  %s26_s26 = sadd.s32 1, %s1428_s22 }
   0x9   : > { %s80_s27 = sadd.s32 1, %s1412_s18  ;;  %p87_p1 = scmp.ne.s32.totalorder %s1412_s18, %s1408_s17 }
   0xa   : > { %s1811_s25 = smov (%p24_p0, %s23_s25), 0  ;;  %s1813_s26 = smov (!%p24_p0, %s26_s26), %s1428_s22 }
   0xb   : > { %s77_s28 = ssub.s32 %s1424_s21, %s1811_s25  ;;  %p88_p2 = scmp.eq.s32.totalorder %s1432_s23, 0 }
   0xc   : > { %p28_p3 = scmp.ge.s32.totalorder %s1813_s26, 2  ;;  %p78_p4 = scmp.eq.s32.totalorder %s77_s28, 0 }
   0xd   : > { %p89_p5 = por %p88_p2, %p87_p1  ;;  %s134_s29 = sadd.s32 1, %s1404_s16 }
   0xe   : > { %s1815_s26 = smov (%p28_p3, %s1813_s26), 0  ;;  %p144_p6 = scmp.ne.s32.totalorder %s1404_s16, %s1400_s15 }
   0xf   : > { %1795 = sst [smem:[#allocation5_spill]] %s1815_s26  ;;  %s129_s5 = ssub.s32 %s1428_s22, %s1815_s26 }
  0x10   : > { %s1552_s30 = scalar_select %p78_p4, %s1412_s18, %s80_s27  }
  0x11   : > { %s131_s6 = sor.u32 %s129_s5, %s77_s28  ;;  %p145_p7 = scmp.eq.s32.totalorder %s931_s24, 5 }
  0x12   : > { %p132_p8 = scmp.eq.s32.totalorder %s131_s6, 0  ;;  %p934_p10 = scmp.ge.s32.totalorder %s1432_s23, 6 }
  0x13   : > { %p1558_p9 = por %p145_p7, %p144_p6 }
  0x14   : > { %s1563_s8 = scalar_select %p132_p8, %s1404_s16, %s134_s29  }
  0x15   : > { %170 = sbr.rel (%p934_p10) target bundleno = 46 (0x2e), region = 20 }
  0x1c   : > { %190 = sbr.rel (!%p89_p5) target bundleno = 46 (0x2e), region = 28  ;;  %s192_s9 = sand.u32 (%p89_p5), 1, %s1412_s18  }
  0x1d   : > { %s936_s10 = sshll.u32 (%p89_p5), %s1424_s21, 3  ;;  %s935_s11 = sshll.u32 (%p89_p5), %s192_s9, 7 }
  0x1e   : > { %s1797_s2 = sld [smem:[#allocation6_spill]] (%p89_p5)  ;;  %s194_s24 = scalar_lea.vmem (%p89_p5), [#allocation3], %s935_s11 }
  0x24   : > { %s1571_s14 = scalar_lea.vmem %s1797_s2, %s936_s10 }
  0x25   : > { %v254_v0 = vld [vmem:[%s1571_s14] sm:$0xff]  ;;  %v256_v1 = vld [vmem:[%s1571_s14 + $0x18] sm:$0xff]  ;;  %v258_v2 = vld [vmem:[%s1571_s14 + $0x30] sm:$0xff] }
  0x26   : > { %255 = vst [vmem:[%s194_s24] sm:$0xff] %v254_v0  ;;  %257 = vst [vmem:[%s194_s24 + $0x8] sm:$0xff] %v256_v1  ;;  %v260_v3 = vld [vmem:[%s1571_s14 + $0x48] sm:$0xff]  ;;  %v262_v4 = vld [vmem:[%s1571_s14 + $0x60] sm:$0xff] }
  0x27   : > { %259 = vst [vmem:[%s194_s24 + $0x10] sm:$0xff] %v258_v2  ;;  %v264_v5 = vld [vmem:[%s1571_s14 + $0x78] sm:$0xff]  ;;  %261 = vst [vmem:[%s194_s24 + $0x18] sm:$0xff] %v260_v3  ;;  %v266_v6 = vld [vmem:[%s1571_s14 + $0x90] sm:$0xff] }
  0x28   : > { %263 = vst [vmem:[%s194_s24 + $0x20] sm:$0xff] %v262_v4  ;;  %265 = vst [vmem:[%s194_s24 + $0x28] sm:$0xff] %v264_v5  ;;  %v268_v7 = vld [vmem:[%s1571_s14 + $0xa8] sm:$0xff]  ;;  %v270_v8 = vld [vmem:[%s1571_s14 + $0xc0] sm:$0xff] }
  0x29   : > { %267 = vst [vmem:[%s194_s24 + $0x30] sm:$0xff] %v266_v6  ;;  %269 = vst [vmem:[%s194_s24 + $0x38] sm:$0xff] %v268_v7  ;;  %v272_v9 = vld [vmem:[%s1571_s14 + $0xd8] sm:$0xff]  ;;  %v274_v10 = vld [vmem:[%s1571_s14 + $0xf0] sm:$0xff] }
  0x2a   : > { %271 = vst [vmem:[%s194_s24 + $0x40] sm:$0xff] %v270_v8  ;;  %v276_v11 = vld [vmem:[%s1571_s14 + $0x108] sm:$0xff]  ;;  %273 = vst [vmem:[%s194_s24 + $0x48] sm:$0xff] %v272_v9  ;;  %v278_v12 = vld [vmem:[%s1571_s14 + $0x120] sm:$0xff] }
  0x2b   : > { %275 = vst [vmem:[%s194_s24 + $0x50] sm:$0xff] %v274_v10  ;;  %277 = vst [vmem:[%s194_s24 + $0x58] sm:$0xff] %v276_v11  ;;  %v280_v13 = vld [vmem:[%s1571_s14 + $0x138] sm:$0xff]  ;;  %v282_v14 = vld [vmem:[%s1571_s14 + $0x150] sm:$0xff] }
  0x2c   : > { %279 = vst [vmem:[%s194_s24 + $0x60] sm:$0xff] %v278_v12  ;;  %281 = vst [vmem:[%s194_s24 + $0x68] sm:$0xff] %v280_v13  ;;  %v284_v15 = vld [vmem:[%s1571_s14 + $0x168] sm:$0xff] }
  0x2d   : > { %283 = vst [vmem:[%s194_s24 + $0x70] sm:$0xff] %v282_v14  ;;  %285 = vst [vmem:[%s194_s24 + $0x78] sm:$0xff] %v284_v15 }
  0x2e PF: > { %p937_p11 = scmp.ge.s32.totalorder %s1432_s23, 1  ;;  %p296_p12 = scmp.lt.s32.totalorder %s1432_s23, 7 }
  0x30   : > { %p297_p13 = pnand %p937_p11, %p296_p12 }
  0x31   : > { %s303_s27 = sand.u32 (!%p297_p13), 1, %s1408_s17   ;;  %s336_s28 = sand.u32 (!%p297_p13), 1, %s1400_s15  }
  0x32   : > { %300 = sbr.rel (%p297_p13) target bundleno = 616 (0x268), region = 70  ;;  %s938_s29 = sshll.u32 (!%p297_p13), %s303_s27, 7 }
  0x33   : > { %s939_s5 = sshll.u32 (!%p297_p13), %s336_s28, 6  ;;  %s1594_s6 = sshll.u32 (!%p297_p13), %s1420_s20, 3 }
  0x34   : > { %p353_p0 = scmp.lt.s32.totalorder (!%p297_p13), %s1416_s19, 2  ;;  %p344_p1 = scmp.lt.s32.totalorder (!%p297_p13), %s1594_s6, 13 }
  0x35   : > { %s1611_s27 = scalar_lea.vmem (!%p297_p13), [#allocation3], %s938_s29  ;;  %s1613_s28 = scalar_lea.vmem (!%p297_p13), [#allocation4], %s939_s5  }
  0x36   : > { %p942_p2 = scmp.ne.s32.totalorder (!%p297_p13), %s1416_s19, 0 }
  0x39   : > { %s1599_s9 = scalar_select %p353_p0, %s1416_s19, 2 }
  0x3a   : > { %s345_s10 = scalar_select %p344_p1, %s1594_s6, 13 }
  0x3b   : > { %s355_s13 = scalar_lea.vmem %s1791_s3, %s1599_s9  ;;  %364 = sbr.rel (%p942_p2) target bundleno = 312 (0x138), region = 78  ;;  %v373_v16 = vld [vmem:[%s1789_s1] sm:$0xff] (!%p942_p2)  ;;  %v374_v17 = vld [vmem:[%s1789_s1 + $0x8] sm:$0xff] (!%p942_p2)  ;;  %v375_v18 = vld [vmem:[%s1789_s1 + $0x10] sm:$0xff] (!%p942_p2) }
  0x3c   : > { %s941_s14 = sshll.u32 %s345_s10, 3  ;;  %v1097_v19 = vpack.c.bf16 (!%p942_p2), %v374_v17, %v373_v16  ;;  %v376_v20 = vld [vmem:[%s1789_s1 + $0x18] sm:$0xff] (!%p942_p2)  ;;  %v377_v22 = vld [vmem:[%s1789_s1 + $0x20] sm:$0xff] (!%p942_p2)  ;;  %v378_v23 = vld [vmem:[%s1789_s1 + $0x28] sm:$0xff] (!%p942_p2) }
  0x3d   : > { %s1609_s15 = scalar_lea.vmem %s1788_s0, %s941_s14  ;;  %v1101_v21 = vpack.c.bf16 (!%p942_p2), %v376_v20, %v375_v18  ;;  %v1105_v24 = vpack.c.bf16 (!%p942_p2), %v378_v23, %v377_v22  ;;  %v379_v27 = vld [vmem:[%s1789_s1 + $0x30] sm:$0xff] (!%p942_p2)  ;;  %v380_v28 = vld [vmem:[%s1789_s1 + $0x38] sm:$0xff] (!%p942_p2)  ;;  %v381_v30 = vld [vmem:[%s1789_s1 + $0x40] sm:$0xff] (!%p942_p2) }
  0x3e   : > { %1098 = vmatprep.subr.bf16.mxu0 (!%p942_p2), %v1097_v19  ;;  %1161 = vmatprep.subr.bf16.mxu1 (!%p942_p2), %v1097_v19  ;;  %v365_v25 = vld [vmem:[%s1609_s15] sm:$0xff] (!%p942_p2)  ;;  %v1109_v29 = vpack.c.bf16 (!%p942_p2), %v380_v28, %v379_v27  ;;  %v382_v31 = vld [vmem:[%s1789_s1 + $0x48] sm:$0xff] (!%p942_p2)  ;;  %v383_v33 = vld [vmem:[%s1789_s1 + $0x50] sm:$0xff] (!%p942_p2) }
  0x3f   : > { %1100 = vmatpush3.bf16.msra.mxu0 (!%p942_p2), %v1097_v19  ;;  %1169 = vmatpush3.bf16.msra.mxu1 (!%p942_p2), %v1097_v19  ;;  %v369_v26 = vld [vmem:[%s1609_s15 + $0x20] sm:$0xff] (!%p942_p2)  ;;  %v1113_v32 = vpack.c.bf16 (!%p942_p2), %v382_v31, %v381_v30  ;;  %v384_v34 = vld [vmem:[%s1789_s1 + $0x58] sm:$0xff] (!%p942_p2)  ;;  %v386_v37 = vld [vmem:[%s1789_s1 + $0x68] sm:$0xff] (!%p942_p2) }
  0x40   : > { %1102 = vmatprep.subr.bf16.mxu0 (!%p942_p2), %v1101_v21  ;;  %1162 = vmatprep.subr.bf16.mxu1 (!%p942_p2), %v1101_v21  ;;  %v1117_v35 = vpack.c.bf16 (!%p942_p2), %v384_v34, %v383_v33  ;;  %v385_v36 = vld [vmem:[%s1789_s1 + $0x60] sm:$0xff] (!%p942_p2)  ;;  %v387_v39 = vld [vmem:[%s1789_s1 + $0x70] sm:$0xff] (!%p942_p2)  ;;  %v388_v40 = vld [vmem:[%s1789_s1 + $0x78] sm:$0xff] (!%p942_p2) }
  0x41   : > { %1041 = vmatprep.mubr.f32.mxu0 (!%p942_p2), %v365_v25  ;;  %1047 = vmatprep.mubr.f32.mxu1 (!%p942_p2), %v369_v26  ;;  %v1121_v38 = vpack.c.bf16 (!%p942_p2), %v386_v37, %v385_v36  ;;  %v1125_v41 = vpack.c.bf16 (!%p942_p2), %v388_v40, %v387_v39  ;;  %v366_v42 = vld [vmem:[%s1609_s15 + $0x8] sm:$0xff] (!%p942_p2)  ;;  %v367_v44 = vld [vmem:[%s1609_s15 + $0x10] sm:$0xff] (!%p942_p2)  ;;  %v368_v46 = vld [vmem:[%s1609_s15 + $0x18] sm:$0xff] (!%p942_p2) }
  0x42   : > { %v370_v43 = vld [vmem:[%s1609_s15 + $0x28] sm:$0xff]  ;;  %v371_v45 = vld [vmem:[%s1609_s15 + $0x30] sm:$0xff]  ;;  %v372_v47 = vld [vmem:[%s1609_s15 + $0x38] sm:$0xff] }
  0x43   : > { %1104 = vmatpush3.bf16.msra.mxu0 %v1101_v21  ;;  %1170 = vmatpush3.bf16.msra.mxu1 %v1101_v21 }
  0x44   : > { %1106 = vmatprep.subr.bf16.mxu0 %v1105_v24  ;;  %1163 = vmatprep.subr.bf16.mxu1 %v1105_v24 }
  0x47   : > { %1108 = vmatpush3.bf16.msra.mxu0 %v1105_v24  ;;  %1171 = vmatpush3.bf16.msra.mxu1 %v1105_v24 }
  0x48   : > { %1110 = vmatprep.subr.bf16.mxu0 %v1109_v29  ;;  %1164 = vmatprep.subr.bf16.mxu1 %v1109_v29 }
  0x4b   : > { %1112 = vmatpush3.bf16.msra.mxu0 %v1109_v29  ;;  %1172 = vmatpush3.bf16.msra.mxu1 %v1109_v29 }
  0x4c   : > { %1114 = vmatprep.subr.bf16.mxu0 %v1113_v32  ;;  %1165 = vmatprep.subr.bf16.mxu1 %v1113_v32 }
  0x4f   : > { %1116 = vmatpush3.bf16.msra.mxu0 %v1113_v32  ;;  %1173 = vmatpush3.bf16.msra.mxu1 %v1113_v32 }
  0x50   : > { %1118 = vmatprep.subr.bf16.mxu0 %v1117_v35  ;;  %1166 = vmatprep.subr.bf16.mxu1 %v1117_v35 }
  0x53   : > { %1120 = vmatpush3.bf16.msra.mxu0 %v1117_v35  ;;  %1174 = vmatpush3.bf16.msra.mxu1 %v1117_v35 }
  0x54   : > { %1122 = vmatprep.subr.bf16.mxu0 %v1121_v38  ;;  %1167 = vmatprep.subr.bf16.mxu1 %v1121_v38 }
  0x57   : > { %1124 = vmatpush3.bf16.msra.mxu0 %v1121_v38  ;;  %1175 = vmatpush3.bf16.msra.mxu1 %v1121_v38 }
  0x58   : > { %1126 = vmatprep.subr.bf16.mxu0 %v1125_v41  ;;  %1168 = vmatprep.subr.bf16.mxu1 %v1125_v41 }
  0x5b   : > { %1128 = vmatpush3.bf16.msra.mxu0 %v1125_v41  ;;  %1176 = vmatpush3.bf16.msra.mxu1 %v1125_v41 }
  0x5e   : > { %1042 = vmatmul.mubr.f32.vlgmr.msra.gmra.mrb[0].mxu0 %v366_v42  ;;  %1048 = vmatmul.mubr.f32.vlgmr.msra.gmra.mrb[0].mxu1 %v370_v43 }
  0x5f   : > { %1044 = vmatprep.mubr.f32.mxu0 %v367_v44  ;;  %1050 = vmatprep.mubr.f32.mxu1 %v371_v45 }
  0x62   : > { %1045 = vmatmul.mubr.f32.gmra.mrb[2].mxu0 %v368_v46  ;;  %1051 = vmatmul.mubr.f32.gmra.mrb[2].mxu1 %v372_v47 }
 0x131   : > { %v1043_v48 = vpop.f32.mrb[0].mxu0  ;;  %v1049_v49 = vpop.f32.mrb[0].mxu1 }
 0x132   : > { %495 = vst [vmem:[#allocation2 + $0x8] sm:$0xff] %v1043_v48  ;;  %499 = vst [vmem:[#allocation2 + $0x28] sm:$0xff] %v1049_v49  ;;  %v455_v50 = vpop.f32.mrb[1].mxu0  ;;  %v475_v51 = vpop.f32.mrb[1].mxu1 }
 0x133   : > { %494 = vst [vmem:[#allocation2] sm:$0xff] %v455_v50  ;;  %498 = vst [vmem:[#allocation2 + $0x20] sm:$0xff] %v475_v51 }
 0x135   : > { %v1046_v52 = vpop.f32.mrb[2].mxu0  ;;  %v1052_v53 = vpop.f32.mrb[2].mxu1 }
 0x136   : > { %497 = vst [vmem:[#allocation2 + $0x18] sm:$0xff] %v1046_v52  ;;  %501 = vst [vmem:[#allocation2 + $0x38] sm:$0xff] %v1052_v53  ;;  %v465_v54 = vpop.f32.mrb[3].mxu0  ;;  %v485_v55 = vpop.f32.mrb[3].mxu1 }
 0x137   : > { %496 = vst [vmem:[#allocation2 + $0x10] sm:$0xff] %v465_v54  ;;  %500 = vst [vmem:[#allocation2 + $0x30] sm:$0xff] %v485_v55 }
 0x138 PF: > { %v510_v56 = vld [vmem:[%s1611_s27] sm:$0xff]  ;;  %v511_v57 = vld [vmem:[%s1611_s27 + $0x8] sm:$0xff]  ;;  %v512_v58 = vld [vmem:[%s1611_s27 + $0x10] sm:$0xff]  ;;  %s654_s9 = ssub.s32 (%p1558_p9), 14, %s1594_s6 }
 0x139   : > { %v1129_v59 = vpack.c.bf16 %v511_v57, %v510_v56  ;;  %v513_v60 = vld [vmem:[%s1611_s27 + $0x18] sm:$0xff]  ;;  %v514_v62 = vld [vmem:[%s1611_s27 + $0x20] sm:$0xff]  ;;  %v515_v63 = vld [vmem:[%s1611_s27 + $0x28] sm:$0xff]  ;;  %p655_p3 = scmp.lt.s32.totalorder (%p1558_p9), %s654_s9, 8 }
 0x13a   : > { %v1133_v61 = vpack.c.bf16 %v513_v60, %v512_v58  ;;  %v1137_v0 = vpack.c.bf16 %v515_v63, %v514_v62  ;;  %v502_v1 = vld [vmem:[#allocation2] sm:$0xff]  ;;  %v516_v3 = vld [vmem:[%s1611_s27 + $0x30] sm:$0xff]  ;;  %v517_v4 = vld [vmem:[%s1611_s27 + $0x38] sm:$0xff] }
 0x13b   : > { %1130 = vmatprep.subr.bf16.mxu0 %v1129_v59  ;;  %1177 = vmatprep.subr.bf16.mxu1 %v1129_v59  ;;  %v506_v2 = vld [vmem:[#allocation2 + $0x20] sm:$0xff]  ;;  %v1141_v5 = vpack.c.bf16 %v517_v4, %v516_v3  ;;  %v519_v7 = vld [vmem:[%s1611_s27 + $0x48] sm:$0xff]  ;;  %v520_v9 = vld [vmem:[%s1611_s27 + $0x50] sm:$0xff] }
 0x13c   : > { %1132 = vmatpush3.bf16.msra.mxu0 %v1129_v59  ;;  %1185 = vmatpush3.bf16.msra.mxu1 %v1129_v59  ;;  %v518_v6 = vld [vmem:[%s1611_s27 + $0x40] sm:$0xff]  ;;  %v521_v10 = vld [vmem:[%s1611_s27 + $0x58] sm:$0xff]  ;;  %v523_v13 = vld [vmem:[%s1611_s27 + $0x68] sm:$0xff] }
 0x13d   : > { %1134 = vmatprep.subr.bf16.mxu0 %v1133_v61  ;;  %1178 = vmatprep.subr.bf16.mxu1 %v1133_v61  ;;  %v1145_v8 = vpack.c.bf16 %v519_v7, %v518_v6  ;;  %v1149_v11 = vpack.c.bf16 %v521_v10, %v520_v9  ;;  %v522_v12 = vld [vmem:[%s1611_s27 + $0x60] sm:$0xff]  ;;  %v524_v15 = vld [vmem:[%s1611_s27 + $0x70] sm:$0xff]  ;;  %v525_v16 = vld [vmem:[%s1611_s27 + $0x78] sm:$0xff] }
 0x13e   : > { %1085 = vmatprep.mubr.f32.mxu0 %v502_v1  ;;  %1091 = vmatprep.mubr.f32.mxu1 %v506_v2  ;;  %v1153_v14 = vpack.c.bf16 %v523_v13, %v522_v12  ;;  %v1157_v17 = vpack.c.bf16 %v525_v16, %v524_v15  ;;  %v503_v18 = vld [vmem:[#allocation2 + $0x8] sm:$0xff]  ;;  %v504_v20 = vld [vmem:[#allocation2 + $0x10] sm:$0xff]  ;;  %v505_v22 = vld [vmem:[#allocation2 + $0x18] sm:$0xff] }
 0x13f   : > { %v507_v19 = vld [vmem:[#allocation2 + $0x28] sm:$0xff]  ;;  %v508_v21 = vld [vmem:[#allocation2 + $0x30] sm:$0xff]  ;;  %v509_v23 = vld [vmem:[#allocation2 + $0x38] sm:$0xff] }
 0x140   : > { %1136 = vmatpush3.bf16.msra.mxu0 %v1133_v61  ;;  %1186 = vmatpush3.bf16.msra.mxu1 %v1133_v61  ;;  %v943_v24 = vld [vmem:[%s355_s13] ss:$0 sm:$0xff]  ;;  %s1193_s13 = smul.u32 (%p1558_p9), 24, %s1420_s20 }
 0x141   : > { %1138 = vmatprep.subr.bf16.mxu0 %v1137_v0  ;;  %1179 = vmatprep.subr.bf16.mxu1 %v1137_v0 }
 0x142   : > { %s660_s11 = sadd.s32 (%p1558_p9), %s1416_s19, %s1193_s13 }
 0x143   : > { %s949_s12 = sshll.u32 (%p1558_p9), %s660_s11, 3 }
 0x144   : > { %1140 = vmatpush3.bf16.msra.mxu0 %v1137_v0  ;;  %1187 = vmatpush3.bf16.msra.mxu1 %v1137_v0  ;;  %s1712_s5 = scalar_lea.vmem (%p1558_p9), %s1792_s4, %s949_s12  }
 0x145   : > { %1142 = vmatprep.subr.bf16.mxu0 %v1141_v5  ;;  %1180 = vmatprep.subr.bf16.mxu1 %v1141_v5 }
 0x148   : > { %1144 = vmatpush3.bf16.msra.mxu0 %v1141_v5  ;;  %1188 = vmatpush3.bf16.msra.mxu1 %v1141_v5 }
 0x149   : > { %1146 = vmatprep.subr.bf16.mxu0 %v1145_v8  ;;  %1181 = vmatprep.subr.bf16.mxu1 %v1145_v8 }
 0x14c   : > { %1148 = vmatpush3.bf16.msra.mxu0 %v1145_v8  ;;  %1189 = vmatpush3.bf16.msra.mxu1 %v1145_v8 }
 0x14d   : > { %1150 = vmatprep.subr.bf16.mxu0 %v1149_v11  ;;  %1182 = vmatprep.subr.bf16.mxu1 %v1149_v11 }
 0x150   : > { %1152 = vmatpush3.bf16.msra.mxu0 %v1149_v11  ;;  %1190 = vmatpush3.bf16.msra.mxu1 %v1149_v11 }
 0x151   : > { %1154 = vmatprep.subr.bf16.mxu0 %v1153_v14  ;;  %1183 = vmatprep.subr.bf16.mxu1 %v1153_v14 }
 0x154   : > { %1156 = vmatpush3.bf16.msra.mxu0 %v1153_v14  ;;  %1191 = vmatpush3.bf16.msra.mxu1 %v1153_v14 }
 0x155   : > { %1158 = vmatprep.subr.bf16.mxu0 %v1157_v17  ;;  %1184 = vmatprep.subr.bf16.mxu1 %v1157_v17 }
 0x158   : > { %1160 = vmatpush3.bf16.msra.mxu0 %v1157_v17  ;;  %1192 = vmatpush3.bf16.msra.mxu1 %v1157_v17 }
 0x15b   : > { %1086 = vmatmul.mubr.f32.vlgmr.msra.gmra.mrb[0].mxu0 %v503_v18  ;;  %1092 = vmatmul.mubr.f32.vlgmr.msra.gmra.mrb[0].mxu1 %v507_v19 }
 0x15c   : > { %1088 = vmatprep.mubr.f32.mxu0 %v504_v20  ;;  %1094 = vmatprep.mubr.f32.mxu1 %v508_v21 }
 0x15f   : > { %1089 = vmatmul.mubr.f32.gmra.mrb[2].mxu0 %v505_v22  ;;  %1095 = vmatmul.mubr.f32.gmra.mrb[2].mxu1 %v509_v23 }
 0x22e   : > { %v1087_v25 = vpop.f32.mrb[0].mxu0  ;;  %v1093_v26 = vpop.f32.mrb[0].mxu1 }
 0x22f   : > { %v605_v27 = vadd.f32 %v1087_v25, %v943_v24  ;;  %v625_v28 = vadd.f32 %v1093_v26, %v943_v24  ;;  %v599_v29 = vpop.f32.mrb[1].mxu0  ;;  %v619_v30 = vpop.f32.mrb[1].mxu1 }
 0x230   : > { %v600_v31 = vadd.f32 %v943_v24, %v599_v29  ;;  %v620_v32 = vadd.f32 %v943_v24, %v619_v30  ;;  %652 = sbr.rel (!%p1558_p9) target bundleno = 616 (0x268), region = 82 }
 0x231   : > { %639 = vst [vmem:[%s1613_s28 + $0x8] sm:$0xff] %v605_v27  ;;  %643 = vst [vmem:[%s1613_s28 + $0x28] sm:$0xff] %v625_v28 }
 0x232   : > { %638 = vst [vmem:[%s1613_s28] sm:$0xff] %v600_v31  ;;  %642 = vst [vmem:[%s1613_s28 + $0x20] sm:$0xff] %v620_v32  ;;  %v1090_v33 = vpop.f32.mrb[2].mxu0  ;;  %v1096_v34 = vpop.f32.mrb[2].mxu1 }
 0x233   : > { %v615_v35 = vadd.f32 %v1090_v33, %v943_v24  ;;  %v635_v36 = vadd.f32 %v1096_v34, %v943_v24  ;;  %v609_v37 = vpop.f32.mrb[3].mxu0  ;;  %v629_v38 = vpop.f32.mrb[3].mxu1 }
 0x234   : > { %v610_v39 = vadd.f32 %v943_v24, %v609_v37  ;;  %v630_v40 = vadd.f32 %v943_v24, %v629_v38 }
 0x235   : > { %641 = vst [vmem:[%s1613_s28 + $0x18] sm:$0xff] %v615_v35  ;;  %645 = vst [vmem:[%s1613_s28 + $0x38] sm:$0xff] %v635_v36 }
 0x236   : > { %640 = vst [vmem:[%s1613_s28 + $0x10] sm:$0xff] %v610_v39  ;;  %644 = vst [vmem:[%s1613_s28 + $0x30] sm:$0xff] %v630_v40 }
 0x237   : > { %s1817_s9 = smov (!%p655_p3, %s654_s9), 8 }
 0x238   : > { %s946_s10 = sshll.u32 %s1817_s9, 7 }
 0x239   : > { %p950_p4 = scmp.eq.s32.totalorder %s946_s10, 0 }
 0x23a   : > { %s1715_s7 = sshrl.u32 (!%p950_p4), %s1817_s9, 3 }
 0x23b   : > { %665 = sbr.rel (%p950_p4) target bundleno = 616 (0x268), region = 86  ;;  %p951_p5 = scmp.le.s32.totalorder (!%p950_p4), %s1715_s7, 0 }
 0x242   : > { %864 = sbr.rel (%p951_p5) target bundleno = 595 (0x253), region = 173  ;;  %s1798_s19 = smov (!%p951_p5), %s1712_s5 }
 0x243   : > { %s1799_s20 = smov (!%p951_p5), %s1613_s28  ;;  %s1724_s6 = smov (!%p951_p5), 0  }
 0x244   : > { %s1726_s24 = smov (!%p951_p5), 0  }
 0x249 LB: >> { %v741_v41 = vld [vmem:[%s1440_s20] sm:$0xff]  ;;  %v743_v42 = vld [vmem:[%s1440_s20 + $0x8] sm:$0xff]  ;;  %v745_v43 = vld [vmem:[%s1440_s20 + $0x10] sm:$0xff]  ;;  %s757_s17 = sadd.s32 1, %s1444_s6  ;;  %s735_s24 = sadd.s32 1, %s1448_s24   ;;  %s1448_s24 = sphi %s1726_s24, %s735_s24   ;;  %s1444_s6 = sphi %s1724_s6, %s1800_s6   ;;  %s1440_s20 = sphi %s1799_s20, %s762_s20   ;;  %s1436_s19 = sphi %s1798_s19, %s763_s19  }
 0x24a   : >> { %742 = vst [vmem:[%s1436_s19] sm:$0xff] %v741_v41  ;;  %744 = vst [vmem:[%s1436_s19 + $0x18] sm:$0xff] %v743_v42  ;;  %v747_v44 = vld [vmem:[%s1440_s20 + $0x18] sm:$0xff]  ;;  %v749_v45 = vld [vmem:[%s1440_s20 + $0x20] sm:$0xff]  ;;  %p758_p6 = scmp.ge.s32.totalorder %s757_s17, %s1715_s7  ;;  %p734_p7 = scmp.ge.s32.totalorder %s735_s24, %s1715_s7 }
 0x24b   : >> { %746 = vst [vmem:[%s1436_s19 + $0x30] sm:$0xff] %v745_v43  ;;  %v751_v46 = vld [vmem:[%s1440_s20 + $0x28] sm:$0xff]  ;;  %748 = vst [vmem:[%s1436_s19 + $0x48] sm:$0xff] %v747_v44  ;;  %v753_v47 = vld [vmem:[%s1440_s20 + $0x30] sm:$0xff] }
 0x24c   : >> { %750 = vst [vmem:[%s1436_s19 + $0x60] sm:$0xff] %v749_v45  ;;  %752 = vst [vmem:[%s1436_s19 + $0x78] sm:$0xff] %v751_v46  ;;  %v755_v48 = vld [vmem:[%s1440_s20 + $0x38] sm:$0xff]  ;;  %s1819_s17 = smov (%p758_p6, %s757_s17), 0  ;;  %737 = sbr.rel (!%p734_p7) target bundleno = 585 (0x249), region = 179 }
 0x24d   : >> { %754 = vst [vmem:[%s1436_s19 + $0x90] sm:$0xff] %v753_v47  ;;  %756 = vst [vmem:[%s1436_s19 + $0xa8] sm:$0xff] %v755_v48  ;;  %s952_s2 = sshll.u32 %s1819_s17, 6  ;;  %s761_s26 = smul.u32 192, %s1819_s17 }
 0x24e   : >> { %s762_s20 = scalar_lea.vmem %s1613_s28, %s952_s2 [#allocation4]   ;;  %s1800_s6 = smov %s1819_s17 }
 0x24f   : >> { %s763_s19 = scalar_lea.vmem %s1712_s5, %s761_s26  }
 0x253 PF: > { %s1748_s15 = sand.u32 7, %s1817_s9   ;;  %s960_s27 = sshll.u32 %s1715_s7, 6 }
 0x254   : > { %s1752_s13 = scalar_lea.vmem %s1613_s28, %s960_s27 [#allocation4]   ;;  %s955_s11 = smul.u32 192, %s1715_s7 }
 0x255   : > { %p956_p8 = scmp.le.s32.totalorder %s1748_s15, 0 }
 0x256   : > { %s770_s12 = scalar_lea.vmem %s1712_s5, %s955_s11   ;;  %s1454_s14 = smov (!%p956_p8), %s1752_s13  }
 0x257   : > { %878 = sbr.rel (%p956_p8) target bundleno = 616 (0x268), region = 184  ;;  %s1450_s10 = smov (!%p956_p8), %s770_s12  }
 0x258   : > { %s1458_s29 = smov (!%p956_p8), 0   ;;  %s1462_s19 = smov (!%p956_p8), 0  }
 0x25e LB: >> { %v780_v49 = vld [vmem:[%s1456_s14] sm:$0xff]  ;;  %s782_s28 = sadd.s32 1, %s1460_s29  ;;  %s774_s19 = sadd.s32 1, %s1464_s19   ;;  %s1464_s19 = sphi %s1462_s19, %s774_s19   ;;  %s1460_s29 = sphi %s1458_s29, %s1459_s29   ;;  %s1456_s14 = sphi %s1454_s14, %s787_s14   ;;  %s1452_s10 = sphi %s1450_s10, %s788_s10  }
 0x25f   : >> { %781 = vst [vmem:[%s1452_s10] sm:$0xff] %v780_v49  ;;  %p783_p9 = scmp.ge.s32.totalorder %s782_s28, %s1748_s15  ;;  %p773_p10 = scmp.ge.s32.totalorder %s774_s19, %s1748_s15 }
 0x261   : >> { %s1821_s28 = smov (%p783_p9, %s782_s28), 0  ;;  %776 = sbr.rel (!%p773_p10) target bundleno = 606 (0x25e), region = 190 }
 0x262   : >> { %s957_s9 = sshll.u32 %s1821_s28, 3  ;;  %s786_s5 = smul.u32 24, %s1821_s28 }
 0x263   : >> { %s787_s14 = scalar_lea.vmem %s1752_s13, %s957_s9 [#allocation4]   ;;  %s1459_s29 = smov %s1821_s28  }
 0x264   : >> { %s788_s10 = scalar_lea.vmem %s770_s12, %s786_s5  }
 0x268 PF: > { %s14_s23 = sadd.s32 1, %s1432_s23   ;;  %s1801_s7 = sld [smem:[#allocation5_spill]] }
 0x269   : > { %p11_p11 = scmp.ge.s32.totalorder %s14_s23, 8   ;;  %s1802_s15 = smov %s1404_s16 }
 0x26a   : > { %s1803_s16 = smov %s1563_s8  ;;  %s1804_s17 = smov %s1412_s18 }
 0x26b   : > { %s1805_s18 = smov %s1552_s30  ;;  %s1806_s19 = smov %s1424_s21 }
 0x26c   : > { %s1807_s20 = smov %s1428_s22  ;;  %s1808_s21 = smov %s1811_s25 }
 0x26d   :  { %13 = sbr.rel (!%p11_p11) target bundleno = 7 (0x7), region = 201 }
 0x26e   : > { %s1809_s22 = smov %s1801_s7 }

</bundles_post_ra>
